<compile_context>
chip_gen: v6e
topology: v6e:2x2x1
jax: 0.10.0
libtpu: 0.0.40
codegen_flags: <defaults>
</compile_context>

<pallas_src>
import functools

import jax
import jax.numpy as jnp
from jax.experimental import pallas as pl
from jax.experimental.pallas import tpu as pltpu


def _omic_mlp_marker_kernel(
    xo_ref, xd_ref,                      # activations (caller dtype, f32)
    w_enc0_ref, b_enc0_ref,              # omic encoder fc1      (bf16 / f32)
    w_enc1_ref, b_enc1_ref,              # omic encoder hidden   (bf16 / f32)
    w_r1o_ref, w_r1d_ref, b_r1_ref,      # regressor fc1 (split omic / marker)
    w_r2_ref, b_r2_ref,                  # regressor fc2
    w_out_ref, b_out_ref,                # regressor out, stored as (1, n2) row
    out_ref,                             # (1, tb) lane-dense sigmoid row
):
    f32 = jnp.float32
    bf16 = jnp.bfloat16

    # Cast the activation blocks to bf16 in-kernel (no wrapper-side HBM pass).
    xo = xo_ref[...].astype(bf16)
    xd = xd_ref[...].astype(bf16)

    # --- omic encoder (MLP): relu(fc1), relu(hidden) ---
    h = jnp.dot(xo, w_enc0_ref[...], preferred_element_type=f32)
    h = jnp.maximum(h + b_enc0_ref[...], 0.0)

    h = jnp.dot(h.astype(bf16), w_enc1_ref[...], preferred_element_type=f32)
    h = jnp.maximum(h + b_enc1_ref[...], 0.0)

    # --- BinaryRegressor (dropout is identity at inference) ---
    # fc1 over concat(h, xd): split-weight form avoids an in-kernel concat.
    z = (jnp.dot(h.astype(bf16), w_r1o_ref[...], preferred_element_type=f32)
         + jnp.dot(xd, w_r1d_ref[...], preferred_element_type=f32)
         + b_r1_ref[...])
    z = jnp.maximum(z, 0.0)

    z = jnp.dot(z.astype(bf16), w_r2_ref[...], preferred_element_type=f32) + b_r2_ref[...]
    z = jnp.maximum(z, 0.0)

    # Final Linear(n2 -> 1): VPU multiply + XLU lane-reduce (no N=1 MXU matmul),
    # then transpose the (tb, 1) column into a lane-dense (1, tb) row so the
    # output store is an unmasked vst.  XLU slot is otherwise idle here.
    logits = jnp.sum(z * w_out_ref[...], axis=-1, keepdims=True) + b_out_ref[...]
    out_ref[...] = jnp.transpose(jax.nn.sigmoid(logits)).astype(out_ref.dtype)


@functools.partial(jax.jit, static_argnames=("block_batch",))
def omic_mlp_marker_forward(xo, xd, params, *, block_batch=1024):
    """Fused forward pass: batch-tiled activations, VMEM-resident weights."""
    batch, inp_dim = xo.shape
    n_marker = xd.shape[1]
    assert params["w_r1d"].shape[0] == n_marker

    LANE = 128
    chunks = pl.cdiv(batch, LANE)          # number of 128-row batch chunks
    if chunks <= 1:
        # Single tile == full arrays: no divisibility constraint, no padding.
        num_tiles, tb = 1, batch
    else:
        # Multi-tile: tb must be a multiple of 128 (lane-dense output block).
        # Use >=2 tiles so both TensorCores get work on v7x; per-tile padding
        # is bounded by < 128 rows (zero for typical aligned batch sizes).
        max_chunks_per_tile = max(1, block_batch // LANE)
        num_tiles = max(2, pl.cdiv(chunks, max_chunks_per_tile))
        chunks_per_tile = pl.cdiv(chunks, num_tiles)
        num_tiles = pl.cdiv(chunks, chunks_per_tile)   # drop empty tiles
        tb = chunks_per_tile * LANE
    # The batch need not divide evenly into tiles: Pallas handles the ragged
    # last block (rows are independent; out-of-range output lanes are never
    # written back), so no wrapper-side pad/cast pass over the activations.

    weight_operands = (
        params["w_enc0"], params["b_enc0"],
        params["w_enc1"], params["b_enc1"],
        params["w_r1o"], params["w_r1d"], params["b_r1"],
        params["w_r2"], params["b_r2"],
        params["w_out_row"], params["b_out"],
    )

    def act_spec(feat):
        return pl.BlockSpec((tb, feat), lambda i: (i, 0))

    def resident(shape):
        # Same block index every grid step -> DMA'd once, held in VMEM.
        return pl.BlockSpec(shape, lambda i: (0, 0))

    in_specs = [act_spec(inp_dim), act_spec(n_marker)]
    in_specs += [resident(w.shape) for w in weight_operands]

    n0 = params["w_enc0"].shape[1]
    n1 = params["w_enc1"].shape[1]
    nn1 = params["w_r2"].shape[0]
    nn2 = params["w_r2"].shape[1]
    flops = 2 * batch * (
        inp_dim * n0 + n0 * n1 + (n1 + n_marker) * nn1 + nn1 * nn2 + nn2
    )
    bytes_accessed = int(
        xo.size * xo.dtype.itemsize
        + xd.size * xd.dtype.itemsize
        + sum(int(w.size) * w.dtype.itemsize for w in weight_operands)
        + batch * 4
    )
    cost = pl.CostEstimate(
        flops=int(flops),
        transcendentals=int(batch),
        bytes_accessed=bytes_accessed,
    )

    out_row = pl.pallas_call(
        _omic_mlp_marker_kernel,
        out_shape=jax.ShapeDtypeStruct((1, batch), jnp.float32),
        grid=(num_tiles,),
        in_specs=in_specs,
        out_specs=pl.BlockSpec((1, tb), lambda i: (0, i)),
        compiler_params=pltpu.CompilerParams(
            dimension_semantics=("parallel",)),   # dual-TC sharding on v7x
        cost_estimate=cost,
    )(xo, xd, *weight_operands)

    return out_row.reshape(batch, 1)


def init_params(key, inp_dim, omic_n_nodes, n_marker, n_nodes1, n_nodes2):
    """Deterministic synthetic parameters.  Linear(in, out) is stored
    transposed as W[in, out] (bf16 MXU operands); biases are [1, out] f32."""
    def linear(k, fan_in, fan_out):
        kw, kb = jax.random.split(k)
        bound = 1.0 / jnp.sqrt(fan_in)
        w = jax.random.uniform(kw, (fan_in, fan_out), jnp.float32, -bound, bound)
        b = jax.random.uniform(kb, (1, fan_out), jnp.float32, -bound, bound)
        return w, b

    keys = jax.random.split(key, 5)
    n0, n1 = omic_n_nodes
    w_enc0, b_enc0 = linear(keys[0], inp_dim, n0)
    w_enc1, b_enc1 = linear(keys[1], n0, n1)

    cat_dim = n1 + n_marker
    w_r1, b_r1 = linear(keys[2], cat_dim, n_nodes1)
    w_r2, b_r2 = linear(keys[3], n_nodes1, n_nodes2)
    w_out, b_out = linear(keys[4], n_nodes2, 1)

    # Split regressor fc1 so concat(h, xd) @ W becomes two matmuls.  w_r1d
    # keeps its true 177 rows (no 177->256 lane padding).
    w_r1o = w_r1[:n1]
    w_r1d = w_r1[n1:]

    bf16 = jnp.bfloat16
    return {
        "w_enc0": w_enc0.astype(bf16), "b_enc0": b_enc0,
        "w_enc1": w_enc1.astype(bf16), "b_enc1": b_enc1,
        "w_r1o": w_r1o.astype(bf16), "w_r1d": w_r1d.astype(bf16), "b_r1": b_r1,
        "w_r2": w_r2.astype(bf16), "b_r2": b_r2,
        # final Linear(n2 -> 1) kept as an f32 row for the in-kernel reduction
        "w_out_row": w_out.T, "b_out": b_out,
    }


def reference_forward(xo, xd, params):
    """Plain-JAX reference of the PyTorch forward (eval mode), using the same
    bf16 matmul operands / f32 accumulation as the kernel."""
    f32, bf16 = jnp.float32, jnp.bfloat16
    h = jnp.dot(xo.astype(bf16), params["w_enc0"], preferred_element_type=f32)
    h = jnp.maximum(h + params["b_enc0"], 0.0)
    h = jnp.dot(h.astype(bf16), params["w_enc1"], preferred_element_type=f32)
    h = jnp.maximum(h + params["b_enc1"], 0.0)

    z = (jnp.dot(h.astype(bf16), params["w_r1o"], preferred_element_type=f32)
         + jnp.dot(xd.astype(bf16), params["w_r1d"], preferred_element_type=f32)
         + params["b_r1"])
    z = jnp.maximum(z, 0.0)
    z = jnp.dot(z.astype(bf16), params["w_r2"], preferred_element_type=f32) + params["b_r2"]
    z = jnp.maximum(z, 0.0)

    logits = jnp.sum(z * params["w_out_row"], axis=-1, keepdims=True) + params["b_out"]
    return jax.nn.sigmoid(logits)


if __name__ == "__main__":
    # Shapes consistent with the module:
    #   hps = {omic_n_nodes: [64, 32], n_nodes1: 64, n_nodes2: 32, drop_out: 0.3}
    #   inp_dim = 64, marker drug input xd has 177 features.
    inp_dim = 64
    omic_n_nodes = (64, 32)
    n_marker = 177
    n_nodes1, n_nodes2 = 64, 32

    key = jax.random.PRNGKey(0)
    k_xo, k_xd, k_params, k_xo2, k_xd2 = jax.random.split(key, 5)
    params = init_params(k_params, inp_dim, omic_n_nodes, n_marker,
                         n_nodes1, n_nodes2)

    # Small single-tile case (grid=(1,), blocks == full arrays, no padding).
    batch = 8
    xo = jax.random.normal(k_xo, (batch, inp_dim), jnp.float32)
    xd = jax.random.normal(k_xd, (batch, n_marker), jnp.float32)
    out = jax.block_until_ready(omic_mlp_marker_forward(xo, xd, params))
    ref = reference_forward(xo, xd, params)
    assert out.shape == (batch, 1)
    assert jnp.allclose(out, ref, atol=1e-3, rtol=1e-3), "mismatch vs reference"

    # Multi-tile case with a ragged last block (exercises dual-TC sharding,
    # pipelined activation tiles, and the lane-dense multi-block output).
    batch2 = 300
    xo2 = jax.random.normal(k_xo2, (batch2, inp_dim), jnp.float32)
    xd2 = jax.random.normal(k_xd2, (batch2, n_marker), jnp.float32)
    out2 = jax.block_until_ready(
        omic_mlp_marker_forward(xo2, xd2, params, block_batch=256))
    ref2 = reference_forward(xo2, xd2, params)
    assert out2.shape == (batch2, 1)
    assert jnp.allclose(out2, ref2, atol=1e-3, rtol=1e-3), "mismatch vs reference"

    print("KERNEL_OK")
</pallas_src>

<mosaic_0001>
module attributes {stable_mosaic.version = 11 : i64} {
  func.func @_omic_mlp_marker_kernel(%arg0: i32, %arg1: memref<8x64xf32, #tpu.memory_space<vmem>>, %arg2: memref<8x177xf32, #tpu.memory_space<vmem>>, %arg3: memref<64x64xbf16, #tpu.memory_space<vmem>>, %arg4: memref<1x64xf32, #tpu.memory_space<vmem>>, %arg5: memref<64x32xbf16, #tpu.memory_space<vmem>>, %arg6: memref<1x32xf32, #tpu.memory_space<vmem>>, %arg7: memref<32x64xbf16, #tpu.memory_space<vmem>>, %arg8: memref<177x64xbf16, #tpu.memory_space<vmem>>, %arg9: memref<1x64xf32, #tpu.memory_space<vmem>>, %arg10: memref<64x32xbf16, #tpu.memory_space<vmem>>, %arg11: memref<1x32xf32, #tpu.memory_space<vmem>>, %arg12: memref<1x32xf32, #tpu.memory_space<vmem>>, %arg13: memref<1x1xf32, #tpu.memory_space<vmem>>, %arg14: memref<1x8xf32, #tpu.memory_space<vmem>>) attributes {dimension_semantics = [#tpu.dimension_semantics<parallel>], iteration_bounds = array<i64: 1>, scalar_prefetch = 0 : i64, scratch_operands = 0 : i64, tpu.core_type = #tpu.core_type<tc>, window_params = [{transform_indices = @transform_0, window_bounds = array<i64: 8, 64>}, {transform_indices = @transform_1, window_bounds = array<i64: 8, 177>}, {pipeline_mode = #tpu.pipeline_mode<synchronous>, transform_indices = @transform_2, window_bounds = array<i64: 64, 64>}, {pipeline_mode = #tpu.pipeline_mode<synchronous>, transform_indices = @transform_3, window_bounds = array<i64: 1, 64>}, {pipeline_mode = #tpu.pipeline_mode<synchronous>, transform_indices = @transform_4, window_bounds = array<i64: 64, 32>}, {pipeline_mode = #tpu.pipeline_mode<synchronous>, transform_indices = @transform_5, window_bounds = array<i64: 1, 32>}, {pipeline_mode = #tpu.pipeline_mode<synchronous>, transform_indices = @transform_6, window_bounds = array<i64: 32, 64>}, {pipeline_mode = #tpu.pipeline_mode<synchronous>, transform_indices = @transform_7, window_bounds = array<i64: 177, 64>}, {pipeline_mode = #tpu.pipeline_mode<synchronous>, transform_indices = @transform_8, window_bounds = array<i64: 1, 64>}, {pipeline_mode = #tpu.pipeline_mode<synchronous>, transform_indices = @transform_9, window_bounds = array<i64: 64, 32>}, {pipeline_mode = #tpu.pipeline_mode<synchronous>, transform_indices = @transform_10, window_bounds = array<i64: 1, 32>}, {pipeline_mode = #tpu.pipeline_mode<synchronous>, transform_indices = @transform_11, window_bounds = array<i64: 1, 32>}, {pipeline_mode = #tpu.pipeline_mode<synchronous>, transform_indices = @transform_12, window_bounds = array<i64: 1, 1>}, {transform_indices = @transform_13, window_bounds = array<i64: 1, 8>}]} {
    %c0 = arith.constant 0 : index
    %c0_0 = arith.constant 0 : index
    %0 = vector.load %arg1[%c0, %c0_0] : memref<8x64xf32, #tpu.memory_space<vmem>>, vector<8x64xf32>
    %1 = arith.truncf %0 : vector<8x64xf32> to vector<8x64xbf16>
    %c0_1 = arith.constant 0 : index
    %c0_2 = arith.constant 0 : index
    %2 = vector.load %arg2[%c0_1, %c0_2] : memref<8x177xf32, #tpu.memory_space<vmem>>, vector<8x177xf32>
    %3 = arith.truncf %2 : vector<8x177xf32> to vector<8x177xbf16>
    %c0_3 = arith.constant 0 : index
    %c0_4 = arith.constant 0 : index
    %4 = vector.load %arg3[%c0_3, %c0_4] : memref<64x64xbf16, #tpu.memory_space<vmem>>, vector<64x64xbf16>
    %cst = arith.constant dense<0.000000e+00> : vector<8x64xf32>
    %5 = tpu.matmul %1, %4, %cst {dimension_numbers = #tpu.dot_dimension_numbers<[1], [0], [0], [1], [0, 0, 1, 1], [], []>} : vector<8x64xbf16>, vector<64x64xbf16>, vector<8x64xf32> -> vector<8x64xf32>
    %c0_5 = arith.constant 0 : index
    %c0_6 = arith.constant 0 : index
    %6 = vector.load %arg4[%c0_5, %c0_6] : memref<1x64xf32, #tpu.memory_space<vmem>>, vector<1x64xf32>
    %7 = vector.broadcast %6 : vector<1x64xf32> to vector<8x64xf32>
    %8 = arith.addf %5, %7 : vector<8x64xf32>
    %cst_7 = arith.constant 0.000000e+00 : f32
    %9 = vector.broadcast %cst_7 : f32 to vector<8x64xf32>
    %10 = arith.maximumf %8, %9 : vector<8x64xf32>
    %11 = arith.truncf %10 : vector<8x64xf32> to vector<8x64xbf16>
    %c0_8 = arith.constant 0 : index
    %c0_9 = arith.constant 0 : index
    %12 = vector.load %arg5[%c0_8, %c0_9] : memref<64x32xbf16, #tpu.memory_space<vmem>>, vector<64x32xbf16>
    %cst_10 = arith.constant dense<0.000000e+00> : vector<8x32xf32>
    %13 = tpu.matmul %11, %12, %cst_10 {dimension_numbers = #tpu.dot_dimension_numbers<[1], [0], [0], [1], [0, 0, 1, 1], [], []>} : vector<8x64xbf16>, vector<64x32xbf16>, vector<8x32xf32> -> vector<8x32xf32>
    %c0_11 = arith.constant 0 : index
    %c0_12 = arith.constant 0 : index
    %14 = vector.load %arg6[%c0_11, %c0_12] : memref<1x32xf32, #tpu.memory_space<vmem>>, vector<1x32xf32>
    %15 = vector.broadcast %14 : vector<1x32xf32> to vector<8x32xf32>
    %16 = arith.addf %13, %15 : vector<8x32xf32>
    %cst_13 = arith.constant 0.000000e+00 : f32
    %17 = vector.broadcast %cst_13 : f32 to vector<8x32xf32>
    %18 = arith.maximumf %16, %17 : vector<8x32xf32>
    %19 = arith.truncf %18 : vector<8x32xf32> to vector<8x32xbf16>
    %c0_14 = arith.constant 0 : index
    %c0_15 = arith.constant 0 : index
    %20 = vector.load %arg7[%c0_14, %c0_15] : memref<32x64xbf16, #tpu.memory_space<vmem>>, vector<32x64xbf16>
    %cst_16 = arith.constant dense<0.000000e+00> : vector<8x64xf32>
    %21 = tpu.matmul %19, %20, %cst_16 {dimension_numbers = #tpu.dot_dimension_numbers<[1], [0], [0], [1], [0, 0, 1, 1], [], []>} : vector<8x32xbf16>, vector<32x64xbf16>, vector<8x64xf32> -> vector<8x64xf32>
    %c0_17 = arith.constant 0 : index
    %c0_18 = arith.constant 0 : index
    %22 = vector.load %arg8[%c0_17, %c0_18] : memref<177x64xbf16, #tpu.memory_space<vmem>>, vector<177x64xbf16>
    %cst_19 = arith.constant dense<0.000000e+00> : vector<8x64xf32>
    %23 = tpu.matmul %3, %22, %cst_19 {dimension_numbers = #tpu.dot_dimension_numbers<[1], [0], [0], [1], [0, 0, 1, 1], [], []>} : vector<8x177xbf16>, vector<177x64xbf16>, vector<8x64xf32> -> vector<8x64xf32>
    %24 = arith.addf %21, %23 : vector<8x64xf32>
    %c0_20 = arith.constant 0 : index
    %c0_21 = arith.constant 0 : index
    %25 = vector.load %arg9[%c0_20, %c0_21] : memref<1x64xf32, #tpu.memory_space<vmem>>, vector<1x64xf32>
    %26 = vector.broadcast %25 : vector<1x64xf32> to vector<8x64xf32>
    %27 = arith.addf %24, %26 : vector<8x64xf32>
    %cst_22 = arith.constant 0.000000e+00 : f32
    %28 = vector.broadcast %cst_22 : f32 to vector<8x64xf32>
    %29 = arith.maximumf %27, %28 : vector<8x64xf32>
    %30 = arith.truncf %29 : vector<8x64xf32> to vector<8x64xbf16>
    %c0_23 = arith.constant 0 : index
    %c0_24 = arith.constant 0 : index
    %31 = vector.load %arg10[%c0_23, %c0_24] : memref<64x32xbf16, #tpu.memory_space<vmem>>, vector<64x32xbf16>
    %cst_25 = arith.constant dense<0.000000e+00> : vector<8x32xf32>
    %32 = tpu.matmul %30, %31, %cst_25 {dimension_numbers = #tpu.dot_dimension_numbers<[1], [0], [0], [1], [0, 0, 1, 1], [], []>} : vector<8x64xbf16>, vector<64x32xbf16>, vector<8x32xf32> -> vector<8x32xf32>
    %c0_26 = arith.constant 0 : index
    %c0_27 = arith.constant 0 : index
    %33 = vector.load %arg11[%c0_26, %c0_27] : memref<1x32xf32, #tpu.memory_space<vmem>>, vector<1x32xf32>
    %34 = vector.broadcast %33 : vector<1x32xf32> to vector<8x32xf32>
    %35 = arith.addf %32, %34 : vector<8x32xf32>
    %cst_28 = arith.constant 0.000000e+00 : f32
    %36 = vector.broadcast %cst_28 : f32 to vector<8x32xf32>
    %37 = arith.maximumf %35, %36 : vector<8x32xf32>
    %c0_29 = arith.constant 0 : index
    %c0_30 = arith.constant 0 : index
    %38 = vector.load %arg12[%c0_29, %c0_30] : memref<1x32xf32, #tpu.memory_space<vmem>>, vector<1x32xf32>
    %39 = vector.broadcast %38 : vector<1x32xf32> to vector<8x32xf32>
    %40 = arith.mulf %37, %39 : vector<8x32xf32>
    %cst_31 = arith.constant dense<0.000000e+00> : vector<8xf32>
    %41 = vector.multi_reduction <add>, %40, %cst_31 [1] : vector<8x32xf32> to vector<8xf32>
    %42 = vector.shape_cast %41 : vector<8xf32> to vector<8x1xf32>
    %c0_32 = arith.constant 0 : index
    %c0_33 = arith.constant 0 : index
    %43 = vector.load %arg13[%c0_32, %c0_33] : memref<1x1xf32, #tpu.memory_space<vmem>>, vector<1x1xf32>
    %44 = vector.broadcast %43 : vector<1x1xf32> to vector<8x1xf32>
    %45 = arith.addf %42, %44 : vector<8x1xf32>
    %46 = arith.negf %45 : vector<8x1xf32>
    %47 = math.exp %46 : vector<8x1xf32>
    %cst_34 = arith.constant 1.000000e+00 : f32
    %48 = vector.broadcast %cst_34 : f32 to vector<8x1xf32>
    %49 = arith.addf %48, %47 : vector<8x1xf32>
    %50 = arith.divf %48, %49 : vector<8x1xf32>
    %51 = tpu.transpose %50, [1, 0] : vector<8x1xf32> -> vector<1x8xf32>
    %c0_35 = arith.constant 0 : index
    %c0_36 = arith.constant 0 : index
    %52 = vector.load %arg14[%c0_35, %c0_36] : memref<1x8xf32, #tpu.memory_space<vmem>>, vector<1x8xf32>
    tpu.vector_store %arg14[%c0_35, %c0_36], %51 {strides = array<i32>} : memref<1x8xf32, #tpu.memory_space<vmem>>, vector<1x8xf32>,
    return
  }
  func.func @transform_0(%arg0: i32) -> (i32, i32) {
    %c0_i32 = arith.constant 0 : i32
    %c0_i32_0 = arith.constant 0 : i32
    return %arg0, %c0_i32 : i32, i32
  }
  func.func @transform_1(%arg0: i32) -> (i32, i32) {
    %c0_i32 = arith.constant 0 : i32
    %c0_i32_0 = arith.constant 0 : i32
    return %arg0, %c0_i32 : i32, i32
  }
  func.func @transform_2(%arg0: i32) -> (i32, i32) {
    %c0_i32 = arith.constant 0 : i32
    %c0_i32_0 = arith.constant 0 : i32
    %c0_i32_1 = arith.constant 0 : i32
    return %c0_i32, %c0_i32_0 : i32, i32
  }
  func.func @transform_3(%arg0: i32) -> (i32, i32) {
    %c0_i32 = arith.constant 0 : i32
    %c0_i32_0 = arith.constant 0 : i32
    %c0_i32_1 = arith.constant 0 : i32
    return %c0_i32, %c0_i32_0 : i32, i32
  }
  func.func @transform_4(%arg0: i32) -> (i32, i32) {
    %c0_i32 = arith.constant 0 : i32
    %c0_i32_0 = arith.constant 0 : i32
    %c0_i32_1 = arith.constant 0 : i32
    return %c0_i32, %c0_i32_0 : i32, i32
  }
  func.func @transform_5(%arg0: i32) -> (i32, i32) {
    %c0_i32 = arith.constant 0 : i32
    %c0_i32_0 = arith.constant 0 : i32
    %c0_i32_1 = arith.constant 0 : i32
    return %c0_i32, %c0_i32_0 : i32, i32
  }
  func.func @transform_6(%arg0: i32) -> (i32, i32) {
    %c0_i32 = arith.constant 0 : i32
    %c0_i32_0 = arith.constant 0 : i32
    %c0_i32_1 = arith.constant 0 : i32
    return %c0_i32, %c0_i32_0 : i32, i32
  }
  func.func @transform_7(%arg0: i32) -> (i32, i32) {
    %c0_i32 = arith.constant 0 : i32
    %c0_i32_0 = arith.constant 0 : i32
    %c0_i32_1 = arith.constant 0 : i32
    return %c0_i32, %c0_i32_0 : i32, i32
  }
  func.func @transform_8(%arg0: i32) -> (i32, i32) {
    %c0_i32 = arith.constant 0 : i32
    %c0_i32_0 = arith.constant 0 : i32
    %c0_i32_1 = arith.constant 0 : i32
    return %c0_i32, %c0_i32_0 : i32, i32
  }
  func.func @transform_9(%arg0: i32) -> (i32, i32) {
    %c0_i32 = arith.constant 0 : i32
    %c0_i32_0 = arith.constant 0 : i32
    %c0_i32_1 = arith.constant 0 : i32
    return %c0_i32, %c0_i32_0 : i32, i32
  }
  func.func @transform_10(%arg0: i32) -> (i32, i32) {
    %c0_i32 = arith.constant 0 : i32
    %c0_i32_0 = arith.constant 0 : i32
    %c0_i32_1 = arith.constant 0 : i32
    return %c0_i32, %c0_i32_0 : i32, i32
  }
  func.func @transform_11(%arg0: i32) -> (i32, i32) {
    %c0_i32 = arith.constant 0 : i32
    %c0_i32_0 = arith.constant 0 : i32
    %c0_i32_1 = arith.constant 0 : i32
    return %c0_i32, %c0_i32_0 : i32, i32
  }
  func.func @transform_12(%arg0: i32) -> (i32, i32) {
    %c0_i32 = arith.constant 0 : i32
    %c0_i32_0 = arith.constant 0 : i32
    %c0_i32_1 = arith.constant 0 : i32
    return %c0_i32, %c0_i32_0 : i32, i32
  }
  func.func @transform_13(%arg0: i32) -> (i32, i32) {
    %c0_i32 = arith.constant 0 : i32
    %c0_i32_0 = arith.constant 0 : i32
    return %c0_i32, %arg0 : i32, i32
  }
}

</mosaic_0001>

<bundles_post_ra>
// kernel: omic_mlp_marker_forward.1
= control target key start
LH: loop header
LB: loop body
LE: loop exit
PB: predicated region body
PF: predicated region fallthrough
CT: control target
= control target key end

     0   :  { %s956_s0 = inlined_call_operand.vmem [shape: f32[8,64], index: 0, kind: input, shape index: {}]   ;;  %s957_s1 = inlined_call_operand.vmem [shape: f32[8,177], index: 1, kind: input, shape index: {}]   ;;  %s958_s2 = inlined_call_operand.vmem [shape: bf16[64,64], index: 2, kind: input, shape index: {}]   ;;  %s959_s3 = inlined_call_operand.vmem [shape: f32[1,64], index: 3, kind: input, shape index: {}]   ;;  %s960_s4 = inlined_call_operand.vmem [shape: bf16[64,32], index: 4, kind: input, shape index: {}]   ;;  %s961_s5 = inlined_call_operand.vmem [shape: f32[1,32], index: 5, kind: input, shape index: {}]   ;;  %s962_s6 = inlined_call_operand.vmem [shape: bf16[32,64], index: 6, kind: input, shape index: {}]   ;;  %s963_s7 = inlined_call_operand.vmem [shape: bf16[177,64], index: 7, kind: input, shape index: {}]   ;;  %s964_s8 = inlined_call_operand.vmem [shape: f32[1,64], index: 8, kind: input, shape index: {}]   ;;  %s965_s9 = inlined_call_operand.vmem [shape: bf16[64,32], index: 9, kind: input, shape index: {}]   ;;  %s966_s10 = inlined_call_operand.vmem [shape: f32[1,32], index: 10, kind: input, shape index: {}]   ;;  %s967_s11 = inlined_call_operand.vmem [shape: f32[1,32], index: 11, kind: input, shape index: {}]   ;;  %s968_s12 = inlined_call_operand.<no memory space> [shape: f32[1,1], index: 12, kind: input, shape index: {}]   ;;  %s969_s13 = inlined_call_operand.hbm [shape: f32[1,8], index: 13, kind: output, shape index: {}]  }
   0x1   :  { %v18_v0 = vstv %s968_s12 }
   0x2   :  { %19 = vst [vmem:[#allocation2] sm:$0x1] %v18_v0 }
   0x3   :  { %v695_v1 = vld [vmem:[%s958_s2 + $0x18] sm:$0xff]   ;;  %v747_v2 = vmov 0.0   ;;  %v696_v3 = vld [vmem:[%s958_s2 + $0x10] sm:$0xff]   ;;  %vm748_vm0 = vmmov 0   ;;  %v697_v4 = vld [vmem:[%s958_s2 + $0x8] sm:$0xff]   ;;  %vm93_vm1 = vcmask 523264  }
   0x4   :  { %647 = vmatprep.subr.bf16.mxu1 %v747_v2  ;;  %655 = vmatprep.mubr.msk.bf16.mxu1 %vm748_vm0, %v747_v2  ;;  %v698_v5 = vld [vmem:[%s958_s2] sm:$0xff]   ;;  %v699_v7 = vld [vmem:[%s960_s4 + $0x18] sm:$0xff]   ;;  %v700_v9 = vld [vmem:[%s960_s4 + $0x10] sm:$0xff]  }
   0x5   :  { %648 = vmatpush3.bf16.msra.mxu1 %v695_v1  ;;  %v48_v6 = vld [vmem:[%s956_s0] sm:$0xff] }
   0x6   :  { %649 = vmatprep.subr.bf16.mxu1 %v747_v2  ;;  %v49_v8 = vpack.c.bf16 %v48_v6, %v48_v6 }
   0x9   :  { %650 = vmatpush3.bf16.msra.mxu1 %v696_v3 }
   0xa   :  { %651 = vmatprep.subr.bf16.mxu1 %v747_v2 }
   0xd   :  { %652 = vmatpush3.bf16.msra.mxu1 %v697_v4 }
   0xe   :  { %653 = vmatprep.subr.bf16.mxu1 %v747_v2 }
  0x11   :  { %654 = vmatpush3.bf16.msra.mxu1 %v698_v5 }
  0x12   :  { %659 = vmatprep.subr.bf16.mxu1 %v747_v2 }
  0x14   :  { %656 = vmatmul.mubr.msk.bf16.vlgmr.msra.gmra.mxu1 %vm93_vm1, %v49_v8 }
  0x15   :  { %660 = vmatpush3.bf16.msra.mxu1 %v699_v7  ;;  %667 = vmatprep.mubr.msk.bf16.mxu1 %vm748_vm0, %v747_v2 }
  0x16   :  { %661 = vmatprep.subr.bf16.mxu1 %v747_v2 }
  0x17   :  { %20 = vsyncpa [#allocation4], 0  ;;  %v701_v10 = vld [vmem:[%s960_s4 + $0x8] sm:$0xff]   ;;  %v702_v11 = vld [vmem:[%s960_s4] sm:$0xff]   ;;  %v749_v13 = vmov 0   ;;  %vm323_vm2 = vcmask 1040384  }
  0x18   :  { %v703_v12 = vld [vmem:[%s963_s7 + $0x38] sm:$0xff]   ;;  %329 = vmatprep.subr.bf16.mxu0 %v749_v13  ;;  %v704_v14 = vld [vmem:[%s963_s7 + $0x30] sm:$0xff]   ;;  %v705_v15 = vld [vmem:[%s963_s7 + $0x28] sm:$0xff]   ;;  %v325_v22 = vsel %vm323_vm2, 65535, %v749_v13  ;;  %vm319_vm3 = vcmask 400384   ;;  %vm381_vm4 = vcmask 261120  }
  0x19   :  { %662 = vmatpush3.bf16.msra.mxu1 %v700_v9  ;;  %330 = vmatpush1.bf16.msra.mxu0 %v703_v12  ;;  %v706_v16 = vld [vmem:[%s963_s7 + $0x20] sm:$0xff]   ;;  %v707_v17 = vld [vmem:[%s963_s7 + $0x18] sm:$0xff]   ;;  %v708_v18 = vld [vmem:[%s963_s7 + $0x10] sm:$0xff]   ;;  %vm575_vm5 = vcmask 57344  }
  0x1a   :  { %663 = vmatprep.subr.bf16.mxu1 %v747_v2  ;;  %331 = vmatprep.subr.bf16.mxu0 %v749_v13  ;;  %v709_v19 = vld [vmem:[%s963_s7 + $0x8] sm:$0xff]   ;;  %v710_v20 = vld [vmem:[%s963_s7] sm:$0xff]   ;;  %v711_v21 = vld [vmem:[%s963_s7 + $0x58] ss:$0 sps:$4 sm:$0x11]  }
  0x1b   :  { %v327_v23 = vand.u32 %v711_v21, %v325_v22  ;;  %v712_v24 = vld [vmem:[%s963_s7 + $0x50] sm:$0xff]   ;;  %v713_v25 = vld [vmem:[%s963_s7 + $0x48] sm:$0xff]   ;;  %v714_v26 = vld [vmem:[%s963_s7 + $0x40] sm:$0xff]  }
  0x1c   :  { %v591_v27 = vld [vmem:[%s959_s3] ss:$0 sm:$0xff]  ;;  %v715_v33 = vld [vmem:[%s962_s6 + $0x8] sm:$0xff]   ;;  %v717_v47 = vld [vmem:[%s965_s9 + $0x18] sm:$0xff]  }
  0x1d   :  { %664 = vmatpush3.bf16.msra.mxu1 %v701_v10  ;;  %332 = vmatpush1.bf16.msra.mxu0 %v704_v14  ;;  %v51_v36 = vld [vmem:[%s957_s1 + $0x8] sm:$0xff]  ;;  %v50_v38 = vld [vmem:[%s957_s1] sm:$0xff]  ;;  %v718_v50 = vld [vmem:[%s965_s9 + $0x10] sm:$0xff]  }
  0x1e   :  { %665 = vmatprep.subr.bf16.mxu1 %v747_v2  ;;  %333 = vmatprep.subr.bf16.mxu0 %v749_v13  ;;  %v53_v37 = vpack.c.bf16 %v51_v36, %v51_v36  ;;  %v52_v39 = vpack.c.bf16 %v50_v38, %v50_v38  ;;  %v716_v40 = vld [vmem:[%s962_s6] sm:$0xff]   ;;  %v719_v55 = vld [vmem:[%s965_s9 + $0x8] sm:$0xff]  }
  0x1f   :  { %v597_v41 = vld [vmem:[%s961_s5] ss:$0 sm:$0xff] }
  0x20   :  { %615 = vmatprep.mubr.msk.bf16.mxu0 %vm319_vm3, %v53_v37  ;;  %v720_v56 = vld [vmem:[%s965_s9] sm:$0xff]  }
  0x21   :  { %666 = vmatpush3.bf16.msra.mxu1 %v702_v11  ;;  %334 = vmatpush1.bf16.msra.mxu0 %v705_v15  ;;  %v619_v58 = vld [vmem:[%s964_s8] ss:$0 sm:$0xff]  ;;  %s750_s8 = smov [#allocation3]  }
  0x22   :  { %671 = vmatprep.subr.bf16.mxu1 %v747_v2  ;;  %335 = vmatprep.subr.bf16.mxu0 %v749_v13  ;;  %v626_v6 = vld [vmem:[%s967_s11] ss:$0 sm:$0xff] }
  0x23   :  { %v627_v12 = vld [vmem:[#allocation2] ss:$0 sm:$0xff] }
  0x25   :  { %336 = vmatpush1.bf16.msra.mxu0 %v706_v16 }
  0x26   :  { %337 = vmatprep.subr.bf16.mxu0 %v749_v13 }
  0x29   :  { %338 = vmatpush1.bf16.msra.mxu0 %v707_v17 }
  0x2a   :  { %339 = vmatprep.subr.bf16.mxu0 %v749_v13 }
  0x2d   :  { %340 = vmatpush1.bf16.msra.mxu0 %v708_v18 }
  0x2e   :  { %341 = vmatprep.subr.bf16.mxu0 %v749_v13 }
  0x31   :  { %342 = vmatpush1.bf16.msra.mxu0 %v709_v19 }
  0x32   :  { %343 = vmatprep.subr.bf16.mxu0 %v749_v13 }
  0x35   :  { %344 = vmatpush1.bf16.msra.mxu0 %v710_v20 }
  0x36   :  { %353 = vmatprep.subr.bf16.mxu0 %v749_v13 }
  0x39   :  { %354 = vmatpush2.bf16.msra.mxu0 %v327_v23 }
  0x3a   :  { %355 = vmatprep.subr.bf16.mxu0 %v749_v13 }
  0x3d   :  { %356 = vmatpush2.bf16.msra.mxu0 %v712_v24 }
  0x3e   :  { %357 = vmatprep.subr.bf16.mxu0 %v749_v13 }
  0x41   :  { %358 = vmatpush2.bf16.msra.mxu0 %v713_v25 }
  0x42   :  { %359 = vmatprep.subr.bf16.mxu0 %v749_v13 }
  0x45   :  { %360 = vmatpush2.bf16.msra.mxu0 %v714_v26 }
  0x48   :  { %362 = vmatmul.mubr.bf16.vlgmr.msra.gmra.mxu0 %v52_v39 }
  0xd4   :  { %v131_v28 = vpop.f32.mrf.mxu1 }
  0xd5   :  { %v132_v29 = vadd.f32 %v591_v27, %v131_v28 }
  0xd6   :  { %v657_v30 = vpop.f32.mrf.mxu1 }
  0xd7   :  { %v137_v31 = vmax.f32 %v132_v29, 0.0 }
  0xd8   :  { %v134_v32 = vpop.f32.mrf.mxu1 }
  0xd9   :  { %v138_v34 = vpack.c.bf16 %v137_v31, %v137_v31 }
  0xda   :  { %v658_v35 = vpop.f32.mrf.mxu1 }
  0xdb   :  { %668 = vmatmul.mubr.msk.bf16.vlgmr.msra.gmra.mxu1 %vm93_vm1, %v138_v34 }
  0xdc   :  { %672 = vmatpush3.bf16.msra.mxu1 %v715_v33  ;;  %675 = vmatprep.mubr.msk.bf16.mxu1 %vm748_vm0, %v747_v2 }
  0xdd   :  { %673 = vmatprep.subr.bf16.mxu1 %v747_v2 }
  0xe0   :  { %674 = vmatpush3.bf16.msra.mxu1 %v716_v40 }
  0xe1   :  { %679 = vmatprep.subr.bf16.mxu1 %v747_v2 }
 0x108   :  { %v363_v51 = vpop.f32.mrf.mxu0 }
 0x10a   :  { %v365_v52 = vpop.f32.mrf.mxu0 }
 0x10c   :  { %v366_v53 = vpop.f32.mrf.mxu0 }
 0x10e   :  { %v367_v54 = vpop.f32.mrf.mxu0 }
 0x19b   :  { %v215_v42 = vpop.f32.mrf.mxu1 }
 0x19c   :  { %v216_v43 = vadd.f32 %v597_v41, %v215_v42 }
 0x19d   :  { %v669_v44 = vpop.f32.mrf.mxu1 }
 0x19e   :  { %v221_v45 = vmax.f32 %v216_v43, 0.0 }
 0x19f   :  { %v218_v46 = vpop.f32.mrf.mxu1 }
 0x1a0   :  { %v222_v48 = vpack.c.bf16 %v221_v45, %v221_v45 }
 0x1a1   :  { %v670_v49 = vpop.f32.mrf.mxu1 }
 0x1a2   :  { %676 = vmatmul.mubr.msk.bf16.vlgmr.msra.gmra.mxu1 %vm381_vm4, %v222_v48 }
 0x1a3   :  { %680 = vmatpush3.bf16.msra.mxu1 %v717_v47  ;;  %687 = vmatprep.mubr.msk.bf16.mxu1 %vm748_vm0, %v747_v2 }
 0x1a4   :  { %681 = vmatprep.subr.bf16.mxu1 %v747_v2 }
 0x1a7   :  { %682 = vmatpush3.bf16.msra.mxu1 %v718_v50 }
 0x1a8   :  { %683 = vmatprep.subr.bf16.mxu1 %v747_v2 }
 0x1ab   :  { %684 = vmatpush3.bf16.msra.mxu1 %v719_v55 }
 0x1ac   :  { %685 = vmatprep.subr.bf16.mxu1 %v747_v2  ;;  %v620_v2 = vld [vmem:[%s966_s10] ss:$0 sm:$0xff]  ;;  %s583_s10 = sshll.u32 %s750_s8, 4  ;;  %s584_s10 = int_to_ptr.vmem [resolvable:$true] %s583_s10 }
 0x1ad   :  { %s725_s11 = scalar_lea.vmem %s584_s10, 16  ;;  %s729_s27 = scalar_lea.vmem %s584_s10, 32 }
 0x1ae   :  { %p726_p0 = scmp.ne.s32.totalorder %s584_s10, %s725_s11  ;;  %p730_p1 = scmp.lt.s32.totalorder %s584_s10, %s584_s10 }
 0x1af   :  { %686 = vmatpush3.bf16.msra.mxu1 %v720_v56  ;;  %p731_p2 = scmp.lt.s32.totalorder %s729_s27, %s725_s11 }
 0x1b1   :  { %p732_p3 = por %p731_p2, %p730_p1 }
 0x1b3   :  { %p733_p4 = pnand %p732_p3, %p726_p0 }
 0x262   :  { %v419_v57 = vpop.f32.mrf.mxu1 }
 0x263   :  { %v420_v59 = vadd.f32 %v419_v57, %v363_v51 }
 0x264   :  { %v677_v60 = vpop.f32.mrf.mxu1 }
 0x265   :  { %v432_v61 = vadd.f32 %v619_v58, %v420_v59 }
 0x266   :  { %v422_v62 = vpop.f32.mrf.mxu1 }
 0x267   :  { %v433_v63 = vmax.f32 %v432_v61, 0.0 }
 0x268   :  { %v678_v0 = vpop.f32.mrf.mxu1 }
 0x269   :  { %v434_v1 = vpack.c.bf16 %v433_v63, %v433_v63 }
 0x26b   :  { %688 = vmatmul.mubr.msk.bf16.vlgmr.msra.gmra.mxu1 %vm93_vm1, %v434_v1 }
 0x32b   :  { %v511_v3 = vpop.f32.mrf.mxu1 }
 0x32c   :  { %v512_v4 = vadd.f32 %v620_v2, %v511_v3 }
 0x32d   :  { %v689_v5 = vpop.f32.mrf.mxu1 }
 0x32e   :  { %v517_v7 = vmax.f32 %v512_v4, 0.0 }
 0x32f   :  { %v514_v8 = vpop.f32.mrf.mxu1 }
 0x330   :  { %v525_v9 = vmul.f32 %v626_v6, %v517_v7 }
 0x331   :  { %v690_v10 = vpop.f32.mrf.mxu1 }
 0x332   :  { %v526_v11 = vsel %vm381_vm4, %v525_v9, 0.0 }
 0x333   :  { %527 = vadd.xlane.f32.xlu0 %v526_v11 }
 0x3bc   :  { %v528_v13 = vpop.xlane.xlu0 %527 }
 0x3bd   :  { %v536_v14 = vadd.f32 %v627_v12, %v528_v13 }
 0x3bf   :  { %v628_v15 = vmul.f32 -1.442695, %v536_v14 }
 0x3c1   :  { %721 = vpow2.f32 %v628_v15 }
 0x3ce   :  { %v722_v16 = vpop.eup %721 }
 0x3cf   :  { %v540_v17 = vadd.f32 1.0, %v722_v16 }
 0x3d1   :  { %723 = vrcp.f32 %v540_v17 }
 0x3de   :  { %v724_v18 = vpop.eup %723 }
 0x3df   :  { %543 = vxpose.xlu0.b32.start.end [1/1] (short) (narrow) %v724_v18, 8 }
 0x45b   :  { %v559_v19 = vpop.trf.xlu0 }
 0x45c   :  { %576 = vst.msk [vmem:[#allocation3] sm:$0x1] %vm575_vm5, %v559_v19 }
 0x45d   :  { %736 = shalt.err (!%p733_p4)
}
 0x45e   :  { %586 = dma.vmem_to_hbm [thread:$0]  %s584_s10, 16, %s969_s13, [#allocation4]  }
 0x45f   :  { %745 = dma.done.wait [#allocation4], 16  }
 0x460   :  { %746 = vsyncadd [#allocation4], 4294967280 }
 0x461   :  { %590 = vsyncpa [#allocation4], 1 }

</bundles_post_ra>
